<compile_context>
chip_gen: v7x
topology: tpu7x:2x2x1
jax: 0.10.0
libtpu: 0.0.40
codegen_flags: <defaults>
</compile_context>

<pallas_src>
import functools
import math

import jax
import jax.numpy as jnp
from jax.experimental import pallas as pl
from jax.experimental.pallas import tpu as pltpu


def _layernorm(x, gamma, beta, eps):
    mu = jnp.mean(x, axis=-1, keepdims=True)
    xc = x - mu
    var = jnp.mean(xc * xc, axis=-1, keepdims=True)
    return xc * jax.lax.rsqrt(var + eps) * gamma + beta


def _gelu_tanh(x):
    # tanh-approx GELU: one EUP tanh instead of the erf polynomial (exp + divide + ~10 VALU ops).
    # Max abs deviation from exact erf-GELU ~3e-3 (well inside the bf16-matmul noise / test tol).
    c = math.sqrt(2.0 / math.pi)
    return 0.5 * x * (1.0 + jnp.tanh(c * (x + 0.044715 * x * x * x)))


def _row_tile(s):
    # 256-row tiles already reach ~85% of the HBM roofline; 512 risks blowing v7x's scoped VMEM.
    for t in (256, 128):
        if s % t == 0:
            return t
    return s


def _pick_head_group(n_heads, seq_len, probs_itemsize=4, budget_bytes=4 << 20):
    # Largest divisor of n_heads whose per-step probs block stays within ~4 MiB.
    best = 1
    for cand in range(1, n_heads + 1):
        if n_heads % cand == 0 and cand * seq_len * seq_len * probs_itemsize <= budget_bytes:
            best = cand
    return best


# ---------------------------------------------------------------------------
# One-time parameter preparation (hoisted out of the per-call path, review #11)
# ---------------------------------------------------------------------------
def prepare_params(params, n_heads, head_group=None, seq_len=512):
    """Fuse QKV, regroup weights per head-group, cast matmul operands to bf16. Call once."""
    (g1, be1, wq, bq, wk, bk, wv, bv, wproj, bproj, w1, b1, w2, b2) = params
    H = wq.shape[0]
    assert H % n_heads == 0
    d = H // n_heads
    if head_group is None:
        head_group = _pick_head_group(n_heads, seq_len)
    assert n_heads % head_group == 0
    ng = n_heads // head_group
    HG = head_group * d

    def cols(w):   # (H, H) -> (ng, H, HG): per-group output-column slab
        return w.reshape(H, ng, HG).transpose(1, 0, 2)

    def bias(b):   # (H,) -> (ng, 1, HG)
        return b.reshape(ng, 1, HG)

    # Per group g the columns are [Q(group) | K(group) | V(group)].
    wqkv_g = jnp.concatenate([cols(wq), cols(wk), cols(wv)], axis=-1).astype(jnp.bfloat16)
    bqkv_g = jnp.concatenate([bias(bq), bias(bk), bias(bv)], axis=-1).astype(jnp.float32)

    return dict(
        n_heads=n_heads, head_group=head_group, d_head=d,
        g1=g1.reshape(1, H).astype(jnp.float32),
        be1=be1.reshape(1, H).astype(jnp.float32),
        wqkv_g=wqkv_g,                                              # (ng, H, 3*HG) bf16
        bqkv_g=bqkv_g,                                              # (ng, 1, 3*HG) f32
        wproj_g=wproj.reshape(ng, HG, H).astype(jnp.bfloat16),      # (ng, HG, H)  bf16
        bproj=bproj.reshape(1, H).astype(jnp.float32),
        w1=w1.astype(jnp.bfloat16), b1=b1.reshape(1, 4 * H).astype(jnp.float32),
        w2=w2.astype(jnp.bfloat16), b2=b2.reshape(1, H).astype(jnp.float32),
    )


# ---------------------------------------------------------------------------
# Kernel 1: LayerNorm1 + fused QKV + attention + output-projection accumulation
#           grid = (batch, head_group); out1 is resident & accumulated across groups.
# ---------------------------------------------------------------------------
def _attn_group_kernel(x_ref, mask_ref, g1_ref, be1_ref, wqkv_ref, bqkv_ref,
                       wproj_ref, bproj_ref, out1_ref, probs_ref, xn_s,
                       *, hg, d_head, eps):
    g = pl.program_id(1)
    HG = hg * d_head
    x = x_ref[0]                                                   # (S, H) f32

    # LayerNorm1 computed once per batch element and cached in VMEM scratch (bf16).
    @pl.when(g == 0)
    def _():
        xn_s[...] = _layernorm(x, g1_ref[...], be1_ref[...], eps).astype(jnp.bfloat16)

    xn = xn_s[...]                                                 # (S, H) bf16

    # Fused Q/K/V projection for THIS head group only: one bf16 MXU matmul, f32 accumulate.
    qkv = jnp.dot(xn, wqkv_ref[0],
                  preferred_element_type=jnp.float32) + bqkv_ref[0]   # (S, 3*HG) f32

    inv_sqrt_d = 1.0 / math.sqrt(d_head)
    neg = 10000.0 * (1.0 - mask_ref[0])                            # (1, S), computed once per step

    ctx_parts = []
    for h in range(hg):                                            # small static unroll (<= 4 typ.)
        lo = h * d_head
        q_h = (qkv[:, lo:lo + d_head] * inv_sqrt_d).astype(jnp.bfloat16)      # 1/sqrt(d) folded in
        k_h = qkv[:, HG + lo:HG + lo + d_head].astype(jnp.bfloat16)
        v_h = qkv[:, 2 * HG + lo:2 * HG + lo + d_head].astype(jnp.bfloat16)

        s = jnp.dot(q_h, k_h.T, preferred_element_type=jnp.float32)           # (S, S)
        s = s - neg                                                            # key mask penalty
        s = s - jnp.max(s, axis=-1, keepdims=True)
        e = jnp.exp(s)
        p = e * pl.reciprocal(jnp.sum(e, axis=-1, keepdims=True), approx=True)  # EUP reciprocal

        # TODO(synk): dropout on the attention probs skipped (eval mode / p=0).
        # NOTE: stored probs may be bf16 while the context matmul uses a bf16 cast of p anyway.
        probs_ref[0, h] = p.astype(probs_ref.dtype)

        ctx_parts.append(jnp.dot(p.astype(jnp.bfloat16), v_h,
                                 preferred_element_type=jnp.float32))         # (S, d) f32

    # Lane-dense group context; single output-projection matmul over the group's HG rows.
    ctx_g = jnp.concatenate(ctx_parts, axis=-1).astype(jnp.bfloat16)           # (S, HG)
    proj = jnp.dot(ctx_g, wproj_ref[0], preferred_element_type=jnp.float32)    # (S, H)

    # Accumulate across head groups directly into the resident out1 block (no merge scratch).
    @pl.when(g == 0)
    def _():
        out1_ref[0] = x + bproj_ref[...] + proj      # residual + bias added exactly once

    @pl.when(g > 0)
    def _():
        out1_ref[0] = out1_ref[0] + proj


# ---------------------------------------------------------------------------
# Kernel 2: LayerNorm1 (re-used, as in the torch code) + FFN (tanh GELU) + residual
# ---------------------------------------------------------------------------
def _ffn_kernel(x_ref, g1_ref, be1_ref, w1_ref, b1_ref, w2_ref, b2_ref, out_ref, *, eps):
    x = x_ref[0]                                                   # (ts, H) f32
    xn = _layernorm(x, g1_ref[...], be1_ref[...], eps).astype(jnp.bfloat16)
    u = jnp.dot(xn, w1_ref[...], preferred_element_type=jnp.float32) + b1_ref[...]   # (ts, 4H)
    g = _gelu_tanh(u)
    y = jnp.dot(g.astype(jnp.bfloat16), w2_ref[...],
                preferred_element_type=jnp.float32) + b2_ref[...]                     # (ts, H)
    out_ref[0] = x + y                                             # dropout skipped (eval mode)


# ---------------------------------------------------------------------------
# Wrapper
# ---------------------------------------------------------------------------
def bert_layer(hidden_states, attention_mask, prepared, eps=1e-12,
               probs_dtype=jnp.float32):
    """Pre-norm BertLayer forward.

    hidden_states: (B, S, H) f32;  attention_mask: (B, S) (1 keep, 0 masked).
    `prepared` comes from prepare_params() (call it once, not per step).
    Returns (out (B,S,H) f32, attention_probs (B, n_heads, S, S) probs_dtype).
    """
    B, S, H = hidden_states.shape
    n_heads = prepared["n_heads"]
    hg = prepared["head_group"]
    d = prepared["d_head"]
    ng = n_heads // hg
    HG = hg * d

    mask3 = attention_mask.reshape(B, 1, S).astype(jnp.float32)
    probs_isz = jnp.dtype(probs_dtype).itemsize

    # ---- attention: grid = (batch, head_group) -----------------------------
    # VMEM budget = double-buffered blocks + scratch + bounded per-step temporaries.
    attn_blocks = (S * H * 4 + S * 4 + 2 * H * 4                    # x, mask, ln params
                   + H * 3 * HG * 2 + 3 * HG * 4                    # W_qkv slab (bf16), bias
                   + HG * H * 2 + H * 4                             # W_proj slab (bf16), bias
                   + S * H * 4 + hg * S * S * probs_isz)            # out1, probs block
    attn_temps = (S * 3 * HG * 4 + 4 * S * S * 4                    # qkv, score/exp temporaries
                  + S * HG * 6 + S * H * 4 + S * H * 2)             # ctx, proj, xn scratch
    attn_vmem = int(min(max(2 * attn_blocks + attn_temps + (4 << 20), 32 << 20), 64 << 20))

    attn_kernel = functools.partial(_attn_group_kernel, hg=hg, d_head=d, eps=eps)
    out1, probs = pl.pallas_call(
        attn_kernel,
        out_shape=(jax.ShapeDtypeStruct((B, S, H), jnp.float32),
                   jax.ShapeDtypeStruct((B, n_heads, S, S), probs_dtype)),
        grid_spec=pltpu.PrefetchScalarGridSpec(
            num_scalar_prefetch=0,
            grid=(B, ng),
            in_specs=[
                pl.BlockSpec((1, S, H), lambda b, g: (b, 0, 0)),           # hidden
                pl.BlockSpec((1, 1, S), lambda b, g: (b, 0, 0)),           # mask
                pl.BlockSpec((1, H), lambda b, g: (0, 0)),                 # ln1 gamma
                pl.BlockSpec((1, H), lambda b, g: (0, 0)),                 # ln1 beta
                pl.BlockSpec((1, H, 3 * HG), lambda b, g: (g, 0, 0)),      # W_qkv group slab (bf16)
                pl.BlockSpec((1, 1, 3 * HG), lambda b, g: (g, 0, 0)),      # b_qkv group
                pl.BlockSpec((1, HG, H), lambda b, g: (g, 0, 0)),          # W_proj row group (bf16)
                pl.BlockSpec((1, H), lambda b, g: (0, 0)),                 # b_proj
            ],
            out_specs=[
                pl.BlockSpec((1, S, H), lambda b, g: (b, 0, 0)),           # out1 (resident, accum)
                pl.BlockSpec((1, hg, S, S), lambda b, g: (b, g, 0, 0)),    # probs per head group
            ],
            scratch_shapes=[pltpu.VMEM((S, H), jnp.bfloat16)],             # cached LayerNorm1(x)
        ),
        compiler_params=pltpu.CompilerParams(
            dimension_semantics=("parallel", "arbitrary"),                 # out1 accumulates over g
            vmem_limit_bytes=attn_vmem),
    )(hidden_states, mask3, prepared["g1"], prepared["be1"],
      prepared["wqkv_g"], prepared["bqkv_g"], prepared["wproj_g"], prepared["bproj"])

    # ---- FFN: grid = (batch, row-tile), fully parallel ----------------------
    ts = _row_tile(S)
    ffn_blocks = (ts * H * 4 + 2 * H * 4 + H * 4 * H * 2 + 4 * H * 4
                  + 4 * H * H * 2 + H * 4 + ts * H * 4)
    ffn_temps = ts * 4 * H * 4 * 2 + ts * H * 6
    ffn_vmem = int(min(max(2 * ffn_blocks + ffn_temps + (4 << 20), 32 << 20), 64 << 20))

    ffn_kernel = functools.partial(_ffn_kernel, eps=eps)
    out = pl.pallas_call(
        ffn_kernel,
        out_shape=jax.ShapeDtypeStruct((B, S, H), jnp.float32),
        grid_spec=pltpu.PrefetchScalarGridSpec(
            num_scalar_prefetch=0,
            grid=(B, S // ts),
            in_specs=[
                pl.BlockSpec((1, ts, H), lambda b, r: (b, r, 0)),          # out1 rows
                pl.BlockSpec((1, H), lambda b, r: (0, 0)),                 # ln1 gamma (re-used)
                pl.BlockSpec((1, H), lambda b, r: (0, 0)),                 # ln1 beta
                pl.BlockSpec((H, 4 * H), lambda b, r: (0, 0)),             # fc1 W (bf16)
                pl.BlockSpec((1, 4 * H), lambda b, r: (0, 0)),             # fc1 b
                pl.BlockSpec((4 * H, H), lambda b, r: (0, 0)),             # fc2 W (bf16)
                pl.BlockSpec((1, H), lambda b, r: (0, 0)),                 # fc2 b
            ],
            out_specs=pl.BlockSpec((1, ts, H), lambda b, r: (b, r, 0)),
        ),
        compiler_params=pltpu.CompilerParams(
            dimension_semantics=("parallel", "parallel"),
            vmem_limit_bytes=ffn_vmem),
    )(out1, prepared["g1"], prepared["be1"], prepared["w1"], prepared["b1"],
      prepared["w2"], prepared["b2"])

    return out, probs


# ---------------------------------------------------------------------------
# Pure-JAX f32 reference mirroring the PyTorch forward (eval mode, exact erf)
# ---------------------------------------------------------------------------
def _reference(x, mask, params, n_heads, eps=1e-12):
    (g1, be1, wq, bq, wk, bk, wv, bv, wproj, bproj, w1, b1, w2, b2) = params
    B, S, H = x.shape
    d = H // n_heads

    def ln(z):
        mu = z.mean(-1, keepdims=True)
        var = ((z - mu) ** 2).mean(-1, keepdims=True)
        return (z - mu) / jnp.sqrt(var + eps) * g1 + be1

    xn = ln(x)
    q = xn @ wq + bq
    k = xn @ wk + bk
    v = xn @ wv + bv

    def split(t):
        return t.reshape(B, S, n_heads, d).transpose(0, 2, 1, 3)

    qh, kh, vh = split(q), split(k), split(v)
    s = jnp.einsum('bhqd,bhkd->bhqk', qh, kh) / math.sqrt(d)
    s = s - 10000.0 * (1.0 - mask[:, None, None, :])
    p = jax.nn.softmax(s, axis=-1)
    ctx = jnp.einsum('bhqk,bhkd->bhqd', p, vh).transpose(0, 2, 1, 3).reshape(B, S, H)
    out1 = x + (ctx @ wproj + bproj)

    y = ln(out1)                                          # torch code re-uses norm1
    u = y @ w1 + b1
    g = u * 0.5 * (1.0 + jax.lax.erf(u / math.sqrt(2.0)))
    out = out1 + (g @ w2 + b2)
    return out, p


if __name__ == "__main__":
    B, S, H, n_heads = 2, 8, 32, 4

    key = jax.random.PRNGKey(0)
    ks = jax.random.split(key, 16)

    def w(k, shape, scale=0.1):
        return (scale * jax.random.normal(k, shape)).astype(jnp.float32)

    x = jax.random.normal(ks[0], (B, S, H), dtype=jnp.float32)
    # mask: last two key positions of batch 1 masked out
    mask = jnp.ones((B, S), jnp.float32).at[1, -2:].set(0.0)

    params = (
        1.0 + w(ks[1], (H,)),                    # ln1 gamma
        w(ks[2], (H,)),                          # ln1 beta
        w(ks[3], (H, H)), w(ks[4], (H,)),        # Wq (in,out), bq
        w(ks[5], (H, H)), w(ks[6], (H,)),        # Wk, bk
        w(ks[7], (H, H)), w(ks[8], (H,)),        # Wv, bv
        w(ks[9], (H, H)), w(ks[10], (H,)),       # Wproj, bproj
        w(ks[11], (H, 4 * H)), w(ks[12], (4 * H,)),  # fc1
        w(ks[13], (4 * H, H)), w(ks[14], (H,)),      # fc2
    )

    # One-time param prep; head_group=2 forces 2 head groups so the cross-group
    # projection-accumulation path is exercised even at toy sizes.
    prepared = prepare_params(params, n_heads, head_group=2, seq_len=S)

    out, probs = bert_layer(x, mask, prepared)
    jax.block_until_ready((out, probs))

    out_ref, probs_ref_v = _reference(x, mask, params, n_heads)
    # bf16 matmul operands (f32 accumulation) + approx reciprocal -> relaxed tolerances.
    assert jnp.allclose(probs, probs_ref_v, atol=2e-2, rtol=2e-2), "probs mismatch"
    assert jnp.allclose(out, out_ref, atol=3e-2, rtol=3e-2), "out mismatch"

    # bf16 probs output (halves the dominant HBM write of the attention kernel).
    out_b, probs_b = bert_layer(x, mask, prepared, probs_dtype=jnp.bfloat16)
    jax.block_until_ready((out_b, probs_b))
    assert jnp.allclose(probs_b.astype(jnp.float32), probs_ref_v, atol=2e-2, rtol=2e-2), \
        "bf16 probs mismatch"
    assert jnp.allclose(out_b, out_ref, atol=3e-2, rtol=3e-2), "out (bf16 probs) mismatch"

    print("KERNEL_OK")
</pallas_src>

<mosaic_0001>
module attributes {stable_mosaic.version = 11 : i64} {
  func.func @_attn_group_kernel(%arg0: i32, %arg1: i32, %arg2: memref<1x8x32xf32, #tpu.memory_space<vmem>>, %arg3: memref<1x1x8xf32, #tpu.memory_space<vmem>>, %arg4: memref<1x32xf32, #tpu.memory_space<vmem>>, %arg5: memref<1x32xf32, #tpu.memory_space<vmem>>, %arg6: memref<1x32x48xbf16, #tpu.memory_space<vmem>>, %arg7: memref<1x1x48xf32, #tpu.memory_space<vmem>>, %arg8: memref<1x16x32xbf16, #tpu.memory_space<vmem>>, %arg9: memref<1x32xf32, #tpu.memory_space<vmem>>, %arg10: memref<1x8x32xf32, #tpu.memory_space<vmem>>, %arg11: memref<1x2x8x8xf32, #tpu.memory_space<vmem>>, %arg12: memref<8x32xbf16, #tpu.memory_space<vmem>>) attributes {dimension_semantics = [#tpu.dimension_semantics<parallel>, #tpu.dimension_semantics<arbitrary>], iteration_bounds = array<i64: 2, 2>, scalar_prefetch = 0 : i64, scratch_operands = 1 : i64, tpu.core_type = #tpu.core_type<tc>, window_params = [{transform_indices = @transform_0, window_bounds = array<i64: 1, 8, 32>}, {transform_indices = @transform_1, window_bounds = array<i64: 1, 1, 8>}, {pipeline_mode = #tpu.pipeline_mode<synchronous>, transform_indices = @transform_2, window_bounds = array<i64: 1, 32>}, {pipeline_mode = #tpu.pipeline_mode<synchronous>, transform_indices = @transform_3, window_bounds = array<i64: 1, 32>}, {transform_indices = @transform_4, window_bounds = array<i64: 1, 32, 48>}, {transform_indices = @transform_5, window_bounds = array<i64: 1, 1, 48>}, {transform_indices = @transform_6, window_bounds = array<i64: 1, 16, 32>}, {pipeline_mode = #tpu.pipeline_mode<synchronous>, transform_indices = @transform_7, window_bounds = array<i64: 1, 32>}, {transform_indices = @transform_8, window_bounds = array<i64: 1, 8, 32>}, {transform_indices = @transform_9, window_bounds = array<i64: 1, 2, 8, 8>}]} {
    %c0 = arith.constant 0 : index
    %c0_0 = arith.constant 0 : index
    %c0_1 = arith.constant 0 : index
    %0 = vector.load %arg2[%c0, %c0_0, %c0_1] : memref<1x8x32xf32, #tpu.memory_space<vmem>>, vector<1x8x32xf32>
    %1 = vector.shape_cast %0 : vector<1x8x32xf32> to vector<8x32xf32>
    %c0_i32 = arith.constant 0 : i32
    %2 = arith.cmpi eq, %arg1, %c0_i32 : i32
    %3 = arith.extui %2 : i1 to i32
    %c0_i32_2 = arith.constant 0 : i32
    %4 = arith.cmpi ne, %3, %c0_i32_2 : i32
    scf.if %4 {
      %c0_41 = arith.constant 0 : index
      %c0_42 = arith.constant 0 : index
      %84 = vector.load %arg4[%c0_41, %c0_42] : memref<1x32xf32, #tpu.memory_space<vmem>>, vector<1x32xf32>
      %c0_43 = arith.constant 0 : index
      %c0_44 = arith.constant 0 : index
      %85 = vector.load %arg5[%c0_43, %c0_44] : memref<1x32xf32, #tpu.memory_space<vmem>>, vector<1x32xf32>
      %cst_45 = arith.constant dense<0.000000e+00> : vector<8xf32>
      %86 = vector.multi_reduction <add>, %1, %cst_45 [1] : vector<8x32xf32> to vector<8xf32>
      %87 = vector.shape_cast %86 : vector<8xf32> to vector<8x1xf32>
      %cst_46 = arith.constant 3.200000e+01 : f32
      %88 = vector.broadcast %cst_46 : f32 to vector<8x1xf32>
      %89 = arith.divf %87, %88 : vector<8x1xf32>
      %90 = vector.broadcast %89 : vector<8x1xf32> to vector<8x32xf32>
      %91 = arith.subf %1, %90 : vector<8x32xf32>
      %92 = arith.mulf %91, %91 : vector<8x32xf32>
      %cst_47 = arith.constant dense<0.000000e+00> : vector<8xf32>
      %93 = vector.multi_reduction <add>, %92, %cst_47 [1] : vector<8x32xf32> to vector<8xf32>
      %94 = vector.shape_cast %93 : vector<8xf32> to vector<8x1xf32>
      %cst_48 = arith.constant 3.200000e+01 : f32
      %95 = vector.broadcast %cst_48 : f32 to vector<8x1xf32>
      %96 = arith.divf %94, %95 : vector<8x1xf32>
      %cst_49 = arith.constant 9.99999996E-13 : f32
      %97 = vector.broadcast %cst_49 : f32 to vector<8x1xf32>
      %98 = arith.addf %96, %97 : vector<8x1xf32>
      %99 = math.rsqrt %98 : vector<8x1xf32>
      %100 = vector.broadcast %99 : vector<8x1xf32> to vector<8x32xf32>
      %101 = arith.mulf %91, %100 : vector<8x32xf32>
      %102 = vector.broadcast %84 : vector<1x32xf32> to vector<8x32xf32>
      %103 = arith.mulf %101, %102 : vector<8x32xf32>
      %104 = vector.broadcast %85 : vector<1x32xf32> to vector<8x32xf32>
      %105 = arith.addf %103, %104 : vector<8x32xf32>
      %106 = arith.truncf %105 : vector<8x32xf32> to vector<8x32xbf16>
      %c0_50 = arith.constant 0 : index
      %c0_51 = arith.constant 0 : index
      %107 = vector.load %arg12[%c0_50, %c0_51] : memref<8x32xbf16, #tpu.memory_space<vmem>>, vector<8x32xbf16>
      tpu.vector_store %arg12[%c0_50, %c0_51], %106 {strides = array<i32>} : memref<8x32xbf16, #tpu.memory_space<vmem>>, vector<8x32xbf16>,
    } else {
    }
    %c0_3 = arith.constant 0 : index
    %c0_4 = arith.constant 0 : index
    %5 = vector.load %arg12[%c0_3, %c0_4] : memref<8x32xbf16, #tpu.memory_space<vmem>>, vector<8x32xbf16>
    %c0_5 = arith.constant 0 : index
    %c0_6 = arith.constant 0 : index
    %c0_7 = arith.constant 0 : index
    %6 = vector.load %arg6[%c0_5, %c0_6, %c0_7] : memref<1x32x48xbf16, #tpu.memory_space<vmem>>, vector<1x32x48xbf16>
    %7 = vector.shape_cast %6 : vector<1x32x48xbf16> to vector<32x48xbf16>
    %cst = arith.constant dense<0.000000e+00> : vector<8x48xf32>
    %8 = tpu.matmul %5, %7, %cst {dimension_numbers = #tpu.dot_dimension_numbers<[1], [0], [0], [1], [0, 0, 1, 1], [], []>} : vector<8x32xbf16>, vector<32x48xbf16>, vector<8x48xf32> -> vector<8x48xf32>
    %c0_8 = arith.constant 0 : index
    %c0_9 = arith.constant 0 : index
    %c0_10 = arith.constant 0 : index
    %9 = vector.load %arg7[%c0_8, %c0_9, %c0_10] : memref<1x1x48xf32, #tpu.memory_space<vmem>>, vector<1x1x48xf32>
    %10 = vector.shape_cast %9 : vector<1x1x48xf32> to vector<1x48xf32>
    %11 = vector.broadcast %10 : vector<1x48xf32> to vector<8x48xf32>
    %12 = arith.addf %8, %11 : vector<8x48xf32>
    %c0_11 = arith.constant 0 : index
    %c0_12 = arith.constant 0 : index
    %c0_13 = arith.constant 0 : index
    %13 = vector.load %arg3[%c0_11, %c0_12, %c0_13] : memref<1x1x8xf32, #tpu.memory_space<vmem>>, vector<1x1x8xf32>
    %14 = vector.shape_cast %13 : vector<1x1x8xf32> to vector<1x8xf32>
    %cst_14 = arith.constant 1.000000e+00 : f32
    %15 = vector.broadcast %cst_14 : f32 to vector<1x8xf32>
    %16 = arith.subf %15, %14 : vector<1x8xf32>
    %cst_15 = arith.constant 1.000000e+04 : f32
    %17 = vector.broadcast %cst_15 : f32 to vector<1x8xf32>
    %18 = arith.mulf %17, %16 : vector<1x8xf32>
    %19 = vector.extract_strided_slice %12 {offsets = [0, 0], sizes = [8, 8], strides = [1, 1]} : vector<8x48xf32> to vector<8x8xf32>
    %cst_16 = arith.constant 0.353553385 : f32
    %20 = vector.broadcast %cst_16 : f32 to vector<8x8xf32>
    %21 = arith.mulf %19, %20 : vector<8x8xf32>
    %22 = arith.truncf %21 : vector<8x8xf32> to vector<8x8xbf16>
    %23 = vector.extract_strided_slice %12 {offsets = [0, 16], sizes = [8, 8], strides = [1, 1]} : vector<8x48xf32> to vector<8x8xf32>
    %24 = arith.truncf %23 : vector<8x8xf32> to vector<8x8xbf16>
    %25 = vector.extract_strided_slice %12 {offsets = [0, 32], sizes = [8, 8], strides = [1, 1]} : vector<8x48xf32> to vector<8x8xf32>
    %26 = arith.truncf %25 : vector<8x8xf32> to vector<8x8xbf16>
    %27 = tpu.transpose %24, [1, 0] : vector<8x8xbf16> -> vector<8x8xbf16>
    %cst_17 = arith.constant dense<0.000000e+00> : vector<8x8xf32>
    %28 = tpu.matmul %22, %27, %cst_17 {dimension_numbers = #tpu.dot_dimension_numbers<[1], [0], [0], [1], [0, 0, 1, 1], [], []>} : vector<8x8xbf16>, vector<8x8xbf16>, vector<8x8xf32> -> vector<8x8xf32>
    %29 = vector.broadcast %18 : vector<1x8xf32> to vector<8x8xf32>
    %30 = arith.subf %28, %29 : vector<8x8xf32>
    %cst_18 = arith.constant dense<0xFF800000> : vector<8xf32>
    %31 = vector.multi_reduction <maximumf>, %30, %cst_18 [1] : vector<8x8xf32> to vector<8xf32>
    %32 = vector.shape_cast %31 : vector<8xf32> to vector<8x1xf32>
    %33 = vector.broadcast %32 : vector<8x1xf32> to vector<8x8xf32>
    %34 = arith.subf %30, %33 : vector<8x8xf32>
    %35 = math.exp %34 : vector<8x8xf32>
    %cst_19 = arith.constant dense<0.000000e+00> : vector<8xf32>
    %36 = vector.multi_reduction <add>, %35, %cst_19 [1] : vector<8x8xf32> to vector<8xf32>
    %37 = vector.shape_cast %36 : vector<8xf32> to vector<8x1xf32>
    %38 = tpu.reciprocal %37 {approx = true} : vector<8x1xf32> -> vector<8x1xf32>
    %39 = vector.broadcast %38 : vector<8x1xf32> to vector<8x8xf32>
    %40 = arith.mulf %35, %39 : vector<8x8xf32>
    %c0_20 = arith.constant 0 : index
    %c0_21 = arith.constant 0 : index
    %c0_22 = arith.constant 0 : index
    %c0_23 = arith.constant 0 : index
    %41 = vector.load %arg11[%c0_20, %c0_21, %c0_22, %c0_23] : memref<1x2x8x8xf32, #tpu.memory_space<vmem>>, vector<1x1x8x8xf32>
    %42 = vector.shape_cast %41 : vector<1x1x8x8xf32> to vector<8x8xf32>
    %43 = vector.shape_cast %40 : vector<8x8xf32> to vector<1x1x8x8xf32>
    tpu.vector_store %arg11[%c0_20, %c0_21, %c0_22, %c0_23], %43 {strides = array<i32>} : memref<1x2x8x8xf32, #tpu.memory_space<vmem>>, vector<1x1x8x8xf32>,
    %44 = arith.truncf %40 : vector<8x8xf32> to vector<8x8xbf16>
    %cst_24 = arith.constant dense<0.000000e+00> : vector<8x8xf32>
    %45 = tpu.matmul %44, %26, %cst_24 {dimension_numbers = #tpu.dot_dimension_numbers<[1], [0], [0], [1], [0, 0, 1, 1], [], []>} : vector<8x8xbf16>, vector<8x8xbf16>, vector<8x8xf32> -> vector<8x8xf32>
    %46 = vector.extract_strided_slice %12 {offsets = [0, 8], sizes = [8, 8], strides = [1, 1]} : vector<8x48xf32> to vector<8x8xf32>
    %cst_25 = arith.constant 0.353553385 : f32
    %47 = vector.broadcast %cst_25 : f32 to vector<8x8xf32>
    %48 = arith.mulf %46, %47 : vector<8x8xf32>
    %49 = arith.truncf %48 : vector<8x8xf32> to vector<8x8xbf16>
    %50 = vector.extract_strided_slice %12 {offsets = [0, 24], sizes = [8, 8], strides = [1, 1]} : vector<8x48xf32> to vector<8x8xf32>
    %51 = arith.truncf %50 : vector<8x8xf32> to vector<8x8xbf16>
    %52 = vector.extract_strided_slice %12 {offsets = [0, 40], sizes = [8, 8], strides = [1, 1]} : vector<8x48xf32> to vector<8x8xf32>
    %53 = arith.truncf %52 : vector<8x8xf32> to vector<8x8xbf16>
    %54 = tpu.transpose %51, [1, 0] : vector<8x8xbf16> -> vector<8x8xbf16>
    %cst_26 = arith.constant dense<0.000000e+00> : vector<8x8xf32>
    %55 = tpu.matmul %49, %54, %cst_26 {dimension_numbers = #tpu.dot_dimension_numbers<[1], [0], [0], [1], [0, 0, 1, 1], [], []>} : vector<8x8xbf16>, vector<8x8xbf16>, vector<8x8xf32> -> vector<8x8xf32>
    %56 = vector.broadcast %18 : vector<1x8xf32> to vector<8x8xf32>
    %57 = arith.subf %55, %56 : vector<8x8xf32>
    %cst_27 = arith.constant dense<0xFF800000> : vector<8xf32>
    %58 = vector.multi_reduction <maximumf>, %57, %cst_27 [1] : vector<8x8xf32> to vector<8xf32>
    %59 = vector.shape_cast %58 : vector<8xf32> to vector<8x1xf32>
    %60 = vector.broadcast %59 : vector<8x1xf32> to vector<8x8xf32>
    %61 = arith.subf %57, %60 : vector<8x8xf32>
    %62 = math.exp %61 : vector<8x8xf32>
    %cst_28 = arith.constant dense<0.000000e+00> : vector<8xf32>
    %63 = vector.multi_reduction <add>, %62, %cst_28 [1] : vector<8x8xf32> to vector<8xf32>
    %64 = vector.shape_cast %63 : vector<8xf32> to vector<8x1xf32>
    %65 = tpu.reciprocal %64 {approx = true} : vector<8x1xf32> -> vector<8x1xf32>
    %66 = vector.broadcast %65 : vector<8x1xf32> to vector<8x8xf32>
    %67 = arith.mulf %62, %66 : vector<8x8xf32>
    %c0_29 = arith.constant 0 : index
    %c1 = arith.constant 1 : index
    %c0_30 = arith.constant 0 : index
    %c0_31 = arith.constant 0 : index
    %68 = vector.load %arg11[%c0_29, %c1, %c0_30, %c0_31] : memref<1x2x8x8xf32, #tpu.memory_space<vmem>>, vector<1x1x8x8xf32>
    %69 = vector.shape_cast %68 : vector<1x1x8x8xf32> to vector<8x8xf32>
    %70 = vector.shape_cast %67 : vector<8x8xf32> to vector<1x1x8x8xf32>
    tpu.vector_store %arg11[%c0_29, %c1, %c0_30, %c0_31], %70 {strides = array<i32>} : memref<1x2x8x8xf32, #tpu.memory_space<vmem>>, vector<1x1x8x8xf32>,
    %71 = arith.truncf %67 : vector<8x8xf32> to vector<8x8xbf16>
    %cst_32 = arith.constant dense<0.000000e+00> : vector<8x8xf32>
    %72 = tpu.matmul %71, %53, %cst_32 {dimension_numbers = #tpu.dot_dimension_numbers<[1], [0], [0], [1], [0, 0, 1, 1], [], []>} : vector<8x8xbf16>, vector<8x8xbf16>, vector<8x8xf32> -> vector<8x8xf32>
    %73 = tpu.concatenate %45, %72 in 1 : vector<8x8xf32>, vector<8x8xf32> -> vector<8x16xf32>
    %74 = arith.truncf %73 : vector<8x16xf32> to vector<8x16xbf16>
    %c0_33 = arith.constant 0 : index
    %c0_34 = arith.constant 0 : index
    %c0_35 = arith.constant 0 : index
    %75 = vector.load %arg8[%c0_33, %c0_34, %c0_35] : memref<1x16x32xbf16, #tpu.memory_space<vmem>>, vector<1x16x32xbf16>
    %76 = vector.shape_cast %75 : vector<1x16x32xbf16> to vector<16x32xbf16>
    %cst_36 = arith.constant dense<0.000000e+00> : vector<8x32xf32>
    %77 = tpu.matmul %74, %76, %cst_36 {dimension_numbers = #tpu.dot_dimension_numbers<[1], [0], [0], [1], [0, 0, 1, 1], [], []>} : vector<8x16xbf16>, vector<16x32xbf16>, vector<8x32xf32> -> vector<8x32xf32>
    %c0_i32_37 = arith.constant 0 : i32
    %78 = arith.cmpi eq, %arg1, %c0_i32_37 : i32
    %79 = arith.extui %78 : i1 to i32
    %c0_i32_38 = arith.constant 0 : i32
    %80 = arith.cmpi ne, %79, %c0_i32_38 : i32
    scf.if %80 {
      %c0_41 = arith.constant 0 : index
      %c0_42 = arith.constant 0 : index
      %84 = vector.load %arg9[%c0_41, %c0_42] : memref<1x32xf32, #tpu.memory_space<vmem>>, vector<1x32xf32>
      %85 = vector.broadcast %84 : vector<1x32xf32> to vector<8x32xf32>
      %86 = arith.addf %1, %85 : vector<8x32xf32>
      %87 = arith.addf %86, %77 : vector<8x32xf32>
      %c0_43 = arith.constant 0 : index
      %c0_44 = arith.constant 0 : index
      %c0_45 = arith.constant 0 : index
      %88 = vector.load %arg10[%c0_43, %c0_44, %c0_45] : memref<1x8x32xf32, #tpu.memory_space<vmem>>, vector<1x8x32xf32>
      %89 = vector.shape_cast %88 : vector<1x8x32xf32> to vector<8x32xf32>
      %90 = vector.shape_cast %87 : vector<8x32xf32> to vector<1x8x32xf32>
      tpu.vector_store %arg10[%c0_43, %c0_44, %c0_45], %90 {strides = array<i32>} : memref<1x8x32xf32, #tpu.memory_space<vmem>>, vector<1x8x32xf32>,
    } else {
    }
    %c0_i32_39 = arith.constant 0 : i32
    %81 = arith.cmpi sgt, %arg1, %c0_i32_39 : i32
    %82 = arith.extui %81 : i1 to i32
    %c0_i32_40 = arith.constant 0 : i32
    %83 = arith.cmpi ne, %82, %c0_i32_40 : i32
    scf.if %83 {
      %c0_41 = arith.constant 0 : index
      %c0_42 = arith.constant 0 : index
      %c0_43 = arith.constant 0 : index
      %84 = vector.load %arg10[%c0_41, %c0_42, %c0_43] : memref<1x8x32xf32, #tpu.memory_space<vmem>>, vector<1x8x32xf32>
      %85 = vector.shape_cast %84 : vector<1x8x32xf32> to vector<8x32xf32>
      %86 = arith.addf %85, %77 : vector<8x32xf32>
      %c0_44 = arith.constant 0 : index
      %c0_45 = arith.constant 0 : index
      %c0_46 = arith.constant 0 : index
      %87 = vector.load %arg10[%c0_44, %c0_45, %c0_46] : memref<1x8x32xf32, #tpu.memory_space<vmem>>, vector<1x8x32xf32>
      %88 = vector.shape_cast %87 : vector<1x8x32xf32> to vector<8x32xf32>
      %89 = vector.shape_cast %86 : vector<8x32xf32> to vector<1x8x32xf32>
      tpu.vector_store %arg10[%c0_44, %c0_45, %c0_46], %89 {strides = array<i32>} : memref<1x8x32xf32, #tpu.memory_space<vmem>>, vector<1x8x32xf32>,
    } else {
    }
    return
  }
  func.func @transform_0(%arg0: i32, %arg1: i32) -> (i32, i32, i32) {
    %c0_i32 = arith.constant 0 : i32
    %c0_i32_0 = arith.constant 0 : i32
    %c0_i32_1 = arith.constant 0 : i32
    return %arg0, %c0_i32, %c0_i32_0 : i32, i32, i32
  }
  func.func @transform_1(%arg0: i32, %arg1: i32) -> (i32, i32, i32) {
    %c0_i32 = arith.constant 0 : i32
    %c0_i32_0 = arith.constant 0 : i32
    %c0_i32_1 = arith.constant 0 : i32
    return %arg0, %c0_i32, %c0_i32_0 : i32, i32, i32
  }
  func.func @transform_2(%arg0: i32, %arg1: i32) -> (i32, i32) {
    %c0_i32 = arith.constant 0 : i32
    %c0_i32_0 = arith.constant 0 : i32
    %c0_i32_1 = arith.constant 0 : i32
    return %c0_i32, %c0_i32_0 : i32, i32
  }
  func.func @transform_3(%arg0: i32, %arg1: i32) -> (i32, i32) {
    %c0_i32 = arith.constant 0 : i32
    %c0_i32_0 = arith.constant 0 : i32
    %c0_i32_1 = arith.constant 0 : i32
    return %c0_i32, %c0_i32_0 : i32, i32
  }
  func.func @transform_4(%arg0: i32, %arg1: i32) -> (i32, i32, i32) {
    %c0_i32 = arith.constant 0 : i32
    %c0_i32_0 = arith.constant 0 : i32
    %c0_i32_1 = arith.constant 0 : i32
    return %arg1, %c0_i32, %c0_i32_0 : i32, i32, i32
  }
  func.func @transform_5(%arg0: i32, %arg1: i32) -> (i32, i32, i32) {
    %c0_i32 = arith.constant 0 : i32
    %c0_i32_0 = arith.constant 0 : i32
    %c0_i32_1 = arith.constant 0 : i32
    return %arg1, %c0_i32, %c0_i32_0 : i32, i32, i32
  }
  func.func @transform_6(%arg0: i32, %arg1: i32) -> (i32, i32, i32) {
    %c0_i32 = arith.constant 0 : i32
    %c0_i32_0 = arith.constant 0 : i32
    %c0_i32_1 = arith.constant 0 : i32
    return %arg1, %c0_i32, %c0_i32_0 : i32, i32, i32
  }
  func.func @transform_7(%arg0: i32, %arg1: i32) -> (i32, i32) {
    %c0_i32 = arith.constant 0 : i32
    %c0_i32_0 = arith.constant 0 : i32
    %c0_i32_1 = arith.constant 0 : i32
    return %c0_i32, %c0_i32_0 : i32, i32
  }
  func.func @transform_8(%arg0: i32, %arg1: i32) -> (i32, i32, i32) {
    %c0_i32 = arith.constant 0 : i32
    %c0_i32_0 = arith.constant 0 : i32
    %c0_i32_1 = arith.constant 0 : i32
    return %arg0, %c0_i32, %c0_i32_0 : i32, i32, i32
  }
  func.func @transform_9(%arg0: i32, %arg1: i32) -> (i32, i32, i32, i32) {
    %c0_i32 = arith.constant 0 : i32
    %c0_i32_0 = arith.constant 0 : i32
    %c0_i32_1 = arith.constant 0 : i32
    return %arg0, %arg1, %c0_i32, %c0_i32_0 : i32, i32, i32, i32
  }
}

</mosaic_0001>

<bundles_post_ra>
// kernel: tpu_custom_call.1
= control target key start
LH: loop header
LB: loop body
LE: loop exit
PB: predicated region body
PF: predicated region fallthrough
CT: control target
= control target key end

     0   :  { %s2130_s0 = inlined_call_operand.hbm [shape: f32[2,8,32], index: 0, kind: input, shape index: {}]   ;;  %s2131_s1 = inlined_call_operand.vmem [shape: f32[2,1,8], index: 1, kind: input, shape index: {}]   ;;  %s2132_s2 = inlined_call_operand.vmem [shape: f32[1,32], index: 2, kind: input, shape index: {}]   ;;  %s2133_s3 = inlined_call_operand.vmem [shape: f32[1,32], index: 3, kind: input, shape index: {}]   ;;  %s2134_s4 = inlined_call_operand.hbm [shape: bf16[2,32,48], index: 4, kind: input, shape index: {}]   ;;  %s2135_s5 = inlined_call_operand.vmem [shape: f32[2,1,48], index: 5, kind: input, shape index: {}]   ;;  %s2136_s6 = inlined_call_operand.vmem [shape: bf16[2,16,32], index: 6, kind: input, shape index: {}]   ;;  %s2137_s7 = inlined_call_operand.vmem [shape: f32[1,32], index: 7, kind: input, shape index: {}]   ;;  %s2138_s8 = inlined_call_operand.hbm [shape: f32[2,8,32], index: 8, kind: output, shape index: {0}]   ;;  %s2139_s9 = inlined_call_operand.hbm [shape: f32[2,4,8,8], index: 9, kind: output, shape index: {1}]  }
   0x1   :  { %2162 = sst [smem:[#allocation28_spill]] %s2130_s0 }
   0x2   :  { %2163 = sst [smem:[#allocation29_spill]] %s2132_s2 }
   0x3   :  { %2164 = sst [smem:[#allocation30_spill]] %s2133_s3 }
   0x4   :  { %2165 = sst [smem:[#allocation31_spill]] %s2134_s4 }
   0x5   :  { %2166 = sst [smem:[#allocation32_spill]] %s2135_s5 }
   0x6   :  { %2167 = sst [smem:[#allocation33_spill]] %s2136_s6 }
   0x7   :  { %2168 = sst [smem:[#allocation34_spill]] %s2137_s7 }
   0x8   :  { %2169 = sst [smem:[#allocation35_spill]] %s2138_s8 }
   0x9   :  { %2170 = sst [smem:[#allocation36_spill]] %s2139_s9 }
   0xa   :  { %15 = vsyncpa [#allocation4], 0 }
   0xb   :  { %17 = vsyncpa [#allocation4 + $0x1], 0 }
   0xc   :  { %18 = vsyncpa [#allocation7], 0 }
   0xd   :  { %20 = vsyncpa [#allocation7 + $0x1], 0 }
   0xe   :  { %21 = vsyncpa [#allocation5], 0 }
   0xf   :  { %23 = vsyncpa [#allocation5 + $0x1], 0 }
  0x10   :  { %24 = vsyncpa [#allocation10], 0 }
  0x11   :  { %26 = vsyncpa [#allocation10 + $0x1], 0  ;;  %s1656_s30 = smov 0   ;;  %s1658_s10 = smov 0  }
  0x12   :  { %s1660_s11 = smov 0   ;;  %s1662_s12 = smov 0  }
  0x13   :  { %s1664_s13 = smov 0   ;;  %s1666_s14 = smov 0  }
  0x14   :  { %s1668_s15 = smov 0   ;;  %s1670_s16 = smov 0  }
  0x15   :  { %s1672_s17 = smov 0   ;;  %s1674_s18 = smov 0  }
  0x16   :  { %s1676_s19 = smov 0   ;;  %s1678_s20 = smov 0  }
  0x17   :  { %s1680_s21 = smov 0   ;;  %s1682_s22 = smov 0  }
  0x18 LB: > { %2171 = sst [smem:[#allocation15_spill]] %s1537_s30  ;;  %s1093_s23 = sadd.s32 4294967295, %s1589_s22   ;;  %s1589_s22 = sphi %s1682_s22, %s32_s22   ;;  %s1585_s21 = sphi %s1680_s21, %s2230_s21   ;;  %s1581_s20 = sphi %s1678_s20, %s2229_s20   ;;  %s1577_s19 = sphi %s1676_s19, %s2228_s19   ;;  %s1573_s18 = sphi %s1674_s18, %s2227_s18   ;;  %s1569_s17 = sphi %s1672_s17, %s2226_s17   ;;  %s1565_s16 = sphi %s1670_s16, %s2238_s16   ;;  %s1561_s15 = sphi %s1668_s15, %s2237_s15   ;;  %s1557_s14 = sphi %s1666_s14, %s2236_s14   ;;  %s1553_s13 = sphi %s1664_s13, %s2235_s13   ;;  %s1549_s12 = sphi %s1662_s12, %s2234_s12   ;;  %s1545_s11 = sphi %s1660_s11, %s2233_s11   ;;  %s1541_s10 = sphi %s1658_s10, %s2232_s10   ;;  %s1537_s30 = sphi %s1656_s30, %s2231_s30  }
  0x19   : > { %2172 = sst [smem:[#allocation16_spill]] %s1561_s15  ;;  %s1094_s24 = sadd.s32 4294967294, %s1589_s22  }
  0x1a   : > { %2173 = sst [smem:[#allocation17_spill]] %s1569_s17  ;;  %p58_p0 = scmp.ne.s32.totalorder %s1569_s17, %s1565_s16 }
  0x1b   : > { %2174 = sst [smem:[#allocation18_spill]] %s1581_s20  ;;  %p59_p1 = scmp.eq.s32.totalorder %s1589_s22, 0 }
  0x1c   : > { %2175 = sst [smem:[#allocation19_spill]] %s1585_s21  ;;  %p64_p2 = scmp.ne.s32.totalorder %s1565_s16, %s1561_s15 }
  0x1d   : > { %2176 = sst [smem:[#allocation20_spill]] %s1589_s22  ;;  %p65_p3 = scmp.eq.s32.totalorder %s1093_s23, 0 }
  0x1e   : > { %p1733_p4 = por %p59_p1, %p58_p0  ;;  %p152_p5 = scmp.ne.s32.totalorder %s1557_s14, %s1553_s13 }
  0x1f   : > { %p1739_p6 = por %p65_p3, %p64_p2  ;;  %p158_p7 = scmp.ne.s32.totalorder %s1553_s13, %s1549_s12 }
  0x20   : > { %p1744_p8 = por %p152_p5, %p59_p1  ;;  %p255_p9 = scmp.eq.s32.totalorder %s1093_s23, 3 }
  0x21   : > { %s2178_s28 = scalar_select %p1739_p6, 1, 0 }
  0x22   : > { %p1748_p10 = por %p158_p7, %p65_p3  ;;  %p261_p11 = scmp.eq.s32.totalorder %s1094_s24, 3 }
  0x23   : > { %p1752_p12 = por %p255_p9, %p58_p0  ;;  %p282_p13 = scmp.ne.s32.totalorder %s1545_s11, %s1541_s10 }
  0x24   : > { %s2180_s26 = scalar_select %p1748_p10, 1, 0 }
  0x25   : > { %s2181_s25 = scalar_select %p1752_p12, 1, 0 }
  0x26   : > { %p1758_p6 = por %p261_p11, %p64_p2  ;;  %p288_p1 = scmp.ne.s32.totalorder %s1541_s10, %s1537_s30 }
  0x27   : > { %2182 = sst [smem:[#allocation21_spill]] %s2181_s25  ;;  %p1764_p5 = por %p282_p13, %p255_p9 }
  0x28   : > { %s2183_s12 = scalar_select %p1758_p6, 1, 0 }
  0x29   : > { %s2185_s23 = scalar_select %p1764_p5, 1, 0 }
  0x2a   : > { %2184 = sst [smem:[#allocation22_spill]] %s2183_s12  ;;  %p1768_p3 = por %p288_p1, %p261_p11 }
  0x2b   : > { %2186 = sst [smem:[#allocation23_spill]] %s2185_s23  ;;  %p1209_p7 = scmp.lt.s32.totalorder %s1589_s22, 4 }
  0x2c   : > { %s2187_s15 = scalar_select %p1768_p3, 1, 0 }
  0x2d   : > { %s318_s24 = sand.u32 1, %s1569_s17   ;;  %s1098_s9 = sshll.u32 %s1585_s21, 7 }
  0x2e   : > { %2188 = sst [smem:[#allocation24_spill]] %s2187_s15  ;;  %s1097_s8 = sshll.u32 %s318_s24, 3 }
  0x2f   : > { %s2189_s0 = sld [smem:[#allocation28_spill]]  ;;  %s322_s30 = scalar_lea.vmem [#allocation3], %s1097_s8 }
  0x30   : > { %s329_s12 = sshll.u32 %s322_s30, 4  ;;  %p1782_p0 = pnand %p1209_p7, %p1733_p4  ;;  %s1786_s12 = int_to_ptr.vmem [resolvable:$true] %s329_s12 }
  0x31   : > { %p1790_p2 = pnand %p1209_p7, %p1744_p8 }
  0x32   : > { %p1349_p13 = pneg %p1782_p0 }
  0x35   : > { %s1778_s3 = scalar_lea.hbm %s2189_s0, %s1098_s9  ;;  %s319_s9 = scalar_lea.sflag [#allocation4], %s318_s24 }
  0x36   : > { %s1347_s25 = scalar_lea.hbm %s1778_s3, 128  ;;  %s1352_s27 = scalar_lea.hbm %s2189_s0, 256 }
  0x37   : > { %p1348_p11 = scmp.ne.s32.totalorder %s1778_s3, %s1347_s25  ;;  %p1353_p8 = scmp.lt.u32.totalorder %s1778_s3, %s2189_s0 }
  0x38   : > { %p1354_p7 = scmp.lt.u32.totalorder %s1352_s27, %s1347_s25  ;;  %p1356_p9 = scmp.lt.u32.totalorder %s1347_s25, %s1778_s3 }
  0x39   : > { %p1350_p4 = pnand %p1349_p13, %p1348_p11 }
  0x3a   : > { %p1355_p3 = por %p1354_p7, %p1353_p8 }
  0x3b   : > { %p1351_p1 = pneg %p1350_p4 }
  0x3c   : > { %p1357_p6 = por %p1356_p9, %p1355_p3 }
  0x3e   : > { %p1358_p5 = pnand %p1357_p6, %p1351_p1 }
  0x40   : > { %1361 = shalt.err (!%p1358_p5)
}
  0x41   : > { %s1362_s24 = scalar_lea.vmem %s1786_s12, 128  ;;  %s1591_s8 = smov [#allocation3]  }
  0x42   : > { %p1363_p11 = scmp.ne.s32.totalorder %s1786_s12, %s1362_s24  ;;  %s1367_s30 = sshll.u32 %s1591_s8, 4  ;;  %s1368_s30 = int_to_ptr.vmem [resolvable:$false] %s1367_s30 }
  0x43   : > { %s1369_s15 = scalar_lea.vmem %s1368_s30, 256  ;;  %p1370_p10 = scmp.lt.s32.totalorder %s1786_s12, %s1368_s30 }
  0x44   : > { %p1365_p4 = pnand %p1363_p11, %p1349_p13  ;;  %p1371_p8 = scmp.lt.s32.totalorder %s1369_s15, %s1362_s24 }
  0x46   : > { %p1366_p12 = pneg %p1365_p4  ;;  %p1372_p7 = por %p1371_p8, %p1370_p10 }
  0x48   : > { %p1373_p3 = pnand %p1372_p7, %p1366_p12 }
  0x4a   : > { %1376 = shalt.err (!%p1373_p3)
}
  0x4b   : > { %1198 = dma.hbm_to_vmem [thread:$0]  (!%p1782_p0), %s1778_s3, 128, %s1786_s12, %s319_s9  }
  0x4c   : > { %p375_p6 = scmp.lt.s32.totalorder %s1589_s22, 5  ;;  %s145_s25 = sadd.s32 1, %s1557_s14 }
  0x4d   : > { %p2192_p10 = scmp.ge.s32.totalorder %s1589_s22, 1  ;;  %s41_s23 = sadd.s32 1, %s1581_s20 }
  0x4e   : > { %s272_s29 = sadd.s32 1, %s1545_s11  ;;  %p42_p5 = scmp.ge.s32.totalorder %s41_s23, 2 }
  0x4f   : > { %p1824_p12 = pnand %p2192_p10, %p375_p6  ;;  %s342_s24 = sand.u32 1, %s1557_s14  }
  0x50   : > { %s1099_s8 = sshll.u32 %s342_s24, 4  ;;  %s2240_s23 = smov (%p42_p5, %s41_s23), 0 }
  0x51   : > { %2194 = sst [smem:[#allocation25_spill]] %s2240_s23  ;;  %s2195_s30 = sadd.s32 1, %s1585_s21 }
  0x52   : > { %s2242_s30 = smov (!%p42_p5, %s2195_s30), %s1585_s21  ;;  %s142_s3 = ssub.s32 %s1581_s20, %s2240_s23 }
  0x53   : > { %p46_p0 = scmp.ge.s32.totalorder %s2242_s30, 2  ;;  %p143_p9 = scmp.eq.s32.totalorder %s142_s3, 0 }
  0x54   : > { %s1134_s12 = sshll.u32 %s1581_s20, 8  ;;  %s346_s9 = scalar_lea.vmem [#allocation6], %s1099_s8 }
  0x55   : > { %s353_s15 = sshll.u32 %s346_s9, 4  ;;  %s2244_s30 = smov (%p46_p0, %s2242_s30), 0  ;;  %s1851_s15 = int_to_ptr.vmem [resolvable:$true] %s353_s15 }
  0x56   : > { %2196 = sst [smem:[#allocation26_spill]] %s2244_s30  ;;  %s48_s22 = ssub.s32 %s1585_s21, %s2244_s30 }
  0x57   : > { %s1842_s0 = scalar_select %p143_p9, %s1557_s14, %s145_s25  }
  0x58   : > { %s2197_s4 = sld [smem:[#allocation31_spill]]  ;;  %p49_p13 = scmp.eq.s32.totalorder %s48_s22, 0 }
  0x59   : > { %s269_s23 = sor.u32 %s142_s3, %s48_s22  ;;  %s2198_s8 = sadd.s32 1, %s1569_s17 }
  0x5a   : > { %p270_p1 = scmp.eq.s32.totalorder %s269_s23, 0  ;;  %s1861_s30 = scalar_lea.sflag [#allocation7], %s342_s24 }
  0x5b   : > { %s1856_s9 = scalar_select %p49_p13, %s1569_s17, %s2198_s8  }
  0x5c   : > { %s1859_s25 = scalar_select %p270_p1, %s1545_s11, %s272_s29  }
  0x5d   : > { %2199 = sst [smem:[#allocation27_spill]] %s1856_s9  ;;  %p1379_p4 = pneg %p1790_p2 }
  0x5e   : > { %s1849_s5 = scalar_lea.hbm %s2197_s4, %s1134_s12  ;;  %s1382_s22 = scalar_lea.hbm %s2197_s4, 512 }
  0x5f   : > { %s1377_s21 = scalar_lea.hbm %s1849_s5, 256  ;;  %p1383_p3 = scmp.lt.u32.totalorder %s1849_s5, %s2197_s4 }
  0x60   : > { %p1378_p11 = scmp.ne.s32.totalorder %s1849_s5, %s1377_s21  ;;  %p1384_p6 = scmp.lt.u32.totalorder %s1382_s22, %s1377_s21 }
  0x61   : > { %p1386_p5 = scmp.lt.u32.totalorder %s1377_s21, %s1849_s5 }
  0x62   : > { %p1380_p8 = pnand %p1379_p4, %p1378_p11  ;;  %p1385_p10 = por %p1384_p6, %p1383_p3 }
  0x64   : > { %p1381_p7 = pneg %p1380_p8  ;;  %p1387_p0 = por %p1386_p5, %p1385_p10 }
  0x66   : > { %p1388_p9 = pnand %p1387_p0, %p1381_p7 }
  0x68   : > { %1391 = shalt.err (!%p1388_p9)
}
  0x69   : > { %s1392_s29 = scalar_lea.vmem %s1851_s15, 256  ;;  %s1592_s24 = smov [#allocation6]  }
  0x6a   : > { %p1393_p13 = scmp.ne.s32.totalorder %s1851_s15, %s1392_s29  ;;  %s1397_s12 = sshll.u32 %s1592_s24, 4  ;;  %s1398_s12 = int_to_ptr.vmem [resolvable:$false] %s1397_s12 }
  0x6b   : > { %s1399_s8 = scalar_lea.vmem %s1398_s12, 512  ;;  %p1400_p8 = scmp.lt.s32.totalorder %s1851_s15, %s1398_s12 }
  0x6c   : > { %p1395_p1 = pnand %p1393_p13, %p1379_p4  ;;  %p1401_p3 = scmp.lt.s32.totalorder %s1399_s8, %s1392_s29 }
  0x6e   : > { %p1396_p11 = pneg %p1395_p1  ;;  %p1402_p6 = por %p1401_p3, %p1400_p8 }
  0x70   : > { %p1403_p10 = pnand %p1402_p6, %p1396_p11 }
  0x72   : > { %1406 = shalt.err (!%p1403_p10)
}
  0x73   : > { %s1593_s21 = smov 64   ;;  %s1594_s2 = smov 4  }
  0x74   : > { %1201 = dma.hbm_to_vmem [thread:$0]  (!%p1790_p2), %s1849_s5, 256, %s1851_s15, %s1861_s30, %s1593_s21, %s1593_s21, %s1594_s2  }
  0x75   : > { %379 = sbr.rel (%p1824_p12) target bundleno = 1951 (0x79f), region = 52  ;;  %s1892_s6 = sand.u32 (!%p1824_p12), 1, %s1565_s16  }
  0x76   : > { %s1103_s22 = sshll.u32 (!%p1824_p12), %s1892_s6, 3  ;;  %s382_s23 = scalar_lea.sflag (!%p1824_p12), [#allocation4], %s1892_s6 }
  0x77   : > { %s385_s3 = scalar_lea.vmem (!%p1824_p12), [#allocation3], %s1103_s22  ;;  %p2200_p4 = scmp.ne.s32.totalorder (!%p1824_p12), %s2178_s28, 0 }
  0x7c   : > { %1520 = dma.done.wait (%p2200_p4), %s382_s23, 128  }
  0x7d   : > { %1522 = vsyncadd (%p2200_p4), %s382_s23, 4294967168  ;;  %s390_s5 = sand.u32 1, %s1553_s13   ;;  %p2201_p2 = scmp.ne.s32.totalorder %s2180_s26, 0 }
  0x7e   : > { %s1901_s7 = sshll.u32 %s390_s5, 4  ;;  %s391_s27 = scalar_lea.sflag [#allocation7], %s390_s5 }
  0x7f   : > { %1524 = dma.done.wait (%p2201_p2), %s391_s27, 256  }
  0x80   : > { %1526 = vsyncadd (%p2201_p2), %s391_s27, 4294967040  ;;  %s2159_s28 = sand.u32 1, %s1541_s10   ;;  %p450_p12 = scmp.lt.s32.totalorder %s1577_s19, 1  ;;  %v1928_v0 = vld [vmem:[%s385_s3] sm:$0xff] }
  0x81   : > { %s1106_s15 = sshll.u32 %s2159_s28, 4  ;;  %p453_p7 = scmp.lt.s32.totalorder %s1573_s18, 1 }
  0x82   : > { %s1914_s29 = scalar_select %p450_p12, %s1577_s19, 1 }
  0x83   : > { %s1917_s24 = scalar_select %p453_p7, %s1573_s18, 1 }
  0x84   : > { %s452_s26 = scalar_lea.vmem %s2131_s1, %s1914_s29  ;;  %s2202_s23 = sld [smem:[#allocation32_spill]] }
  0x85   : > { %s1135_s27 = sshll.u32 %s1917_s24, 3  ;;  %s2203_s4 = sld [smem:[#allocation33_spill]] }
  0x86   : > { %s1935_s9 = scalar_lea.vmem [#allocation8], %s1103_s22  ;;  %s1937_s17 = scalar_lea.vmem [#allocation9], %s1106_s15 }
  0x87   : > { %p1109_p5 = scmp.ne.s32.totalorder %s1573_s18, 0 }
  0x88   : > { %vm470_vm0 = vcmask (!%p1109_p5), 261120   ;;  %s2204_s3 = sld [smem:[#allocation29_spill]] (!%p1109_p5)  ;;  %s2205_s15 = sld [smem:[#allocation30_spill]] (!%p1109_p5)  ;;  %vm500_vm1 = vcmask (!%p1109_p5), 257024  }
  0x89   : > { %467 = sbr.rel (%p1109_p5) target bundleno = 453 (0x1c5), region = 64  ;;  %v471_v1 = vsel (!%p1109_p5), %vm470_vm0, %v1928_v0, 0.0 }
  0x8a   : > { %s455_s5 = scalar_lea.vmem %s2202_s23, %s1917_s24  ;;  %472 = vadd.xlane.f32.xlu0 (!%p1109_p5), %v471_v1 }
  0x8b   : > { %s1933_s20 = scalar_lea.vmem %s2203_s4, %s1135_s27 }
  0x8e   : > { %v1110_v11 = vld [vmem:[%s2204_s3] ss:$0 sm:$0xff] (!%p1109_p5) }
  0x8f   : > { %v1111_v13 = vld [vmem:[%s2205_s15] ss:$0 sm:$0xff] (!%p1109_p5) }
 0x117   : > { %v473_v2 = vpop.xlane.xlu0 %472 }
 0x118   : > { %v475_v3 = vmul.f32 0.03125, %v473_v2 }
 0x11a   : > { %v476_v4 = vsub.f32 %v1928_v0, %v475_v3 }
 0x11c   : > { %v477_v5 = vmul.f32 %v476_v4, %v476_v4 }
 0x11e   : > { %v478_v6 = vsel %vm470_vm0, %v477_v5, 0.0 }
 0x11f   : > { %479 = vadd.xlane.f32.xlu0 %v478_v6 }
 0x1ac   : > { %v480_v7 = vpop.xlane.xlu0 %479 }
 0x1ad   : > { %v481_v8 = vmul.f32 0.03125, %v480_v7 }
 0x1af   : > { %v482_v9 = vadd.f32 1e-12, %v481_v8 }
 0x1b1   : > { %1334 = vrsqrt.f32 %v482_v9 }
 0x1bb   : > { %v1335_v10 = vpop.eup %1334 }
 0x1bc   : > { %v484_v12 = vmul.f32 %v1335_v10, %v476_v4 }
 0x1be   : > { %v491_v14 = vmul.f32 %v1110_v11, %v484_v12 }
 0x1c0   : > { %v498_v15 = vadd.f32 %v1111_v13, %v491_v14 }
 0x1c2   : > { %v499_v16 = vpack.c.bf16 %v498_v15, %v498_v15 }
 0x1c4   : > { %501 = vst.msk [vmem:[#allocation2] sm:$0xf] %vm500_vm1, %v499_v16 }
 0x1c5 PF: > { %s2206_s12 = scalar_lea.vmem [#allocation6], %s1901_s7  ;;  %v1595_v18 = vmov 0.0   ;;  %vm1596_vm2 = vmmov 0   ;;  %vm526_vm3 = vcmask 261120   ;;  %v1112_v21 = vld [vmem:[%s455_s5] ss:$0 sm:$0xff]  ;;  %v627_v35 = vlaneseq }
 0x1c6   : > { %v1336_v17 = vld [vmem:[%s2206_s12] sm:$0xff]   ;;  %1149 = vmatprep.subr.bf16.mxu0 %v1595_v18  ;;  %1157 = vmatprep.subr.bf16.mxu1 %v1595_v18  ;;  %s2207_s8 = smov %s2206_s12  ;;  %s1597_s23 = smov 112   ;;  %vm579_vm4 = vcmask 64512   ;;  %v570_v36 = vld [vmem:[%s452_s26] sm:$0x1]  ;;  %vm651_vm5 = vcmask 1043456  }
 0x1c7   : > { %1150 = vmatpush3.bf16.msra.mxu0 %v1336_v17  ;;  %v1337_v19 = vld [vmem:[%s2207_s8 + $0x8] sm:$0xff]   ;;  %1153 = vmatprep.mubr.msk.bf16.mxu0 %vm1596_vm2, %v1595_v18  ;;  %s1598_s27 = smov 120   ;;  %s1599_s4 = smov 104   ;;  %v571_v37 = vsub.f32 1.0, %v570_v36  ;;  %v628_v38 = vshrl.u32 %v627_v35, 7  ;;  %v1338_v13 = vld [vmem:[%s1933_s20] sm:$0xff]  }
 0x1c8   : > { %1151 = vmatprep.subr.bf16.mxu0 %v1595_v18  ;;  %1159 = vmatprep.mubr.msk.bf16.mxu1 %vm1596_vm2, %v1595_v18  ;;  %s1600_s29 = smov 96   ;;  %s1601_s26 = smov 88   ;;  %vm823_vm6 = vcmask 130048  }
 0x1c9   : > { %v572_v39 = vmul.f32 10000.0, %v571_v37  ;;  %v629_v40 = vsub.s32 0, %v628_v38  ;;  %s1602_s22 = smov 8   ;;  %s2209_s30 = sld [smem:[#allocation34_spill]] (!%p1109_p5) }
 0x1cb   : > { %1152 = vmatpush3.bf16.msra.mxu0 %v1337_v19  ;;  %v502_v20 = vld [vmem:[#allocation2] sm:$0xf]  ;;  %v630_v41 = vrot.slane %v572_v39, %v629_v40 }
 0x1cc   : > { %1163 = vmatprep.subr.bf16.mxu0 %v1595_v18 }
 0x1ce   : > { %1154 = vmatmul.mubr.msk.bf16.vlgmr.msra.gmra.mrb[0].mxu0 %vm526_vm3, %v502_v20 }
 0x1cf   : > { %1165 = vmatprep.mubr.msk.bf16.mxu0 %vm1596_vm2, %v1595_v18 }
 0x2a1   : > { %v564_v22 = vpop.f32.mrb[0].mxu0 }
 0x2a2   : > { %v565_v23 = vadd.f32 %v1112_v21, %v564_v22  ;;  %v1155_v24 = vpop.f32.mrb[1].mxu0 }
 0x2a3   : > { %v567_v25 = vpop.f32.mrb[2].mxu0 }
 0x2a4   : > { %v575_v26 = vpack.c.bf16 %v565_v23, %v565_v23  ;;  %v1156_v27 = vpop.f32.mrb[3].mxu0  ;;  %v573_v28 = vmul.f32 0.35355338, %v565_v23 }
 0x2a6   : > { %577 = vrot.lane.b32.xlu0 %v575_v26, %s1597_s23  ;;  %v574_v29 = vpack.c.bf16 %v573_v28, %v573_v28 }
 0x2a8   : > { %696 = vrot.lane.b32.xlu1 %v574_v29, %s1598_s27 }
 0x2aa   : > { %698 = vrot.lane.b32.xlu0 %v575_v26, %s1599_s4 }
 0x318   : > { %v578_v30 = vpop.permute.xlu0 %577 }
 0x319   : > { %v584_v31 = vsel %vm579_vm4, %v578_v30, 0 }
 0x31a   : > { %1158 = vmatpush3.bf16.xpose.msra.mxu1 %v584_v31  ;;  %v697_v34 = vpop.permute.xlu1 %696 }
 0x31b   : > { %1169 = vmatprep.subr.bf16.mxu1 %v1595_v18 }
 0x31c   : > { %v699_v32 = vpop.permute.xlu0 %698 }
 0x31d   : > { %v704_v33 = vsel %vm579_vm4, %v699_v32, 0 }
 0x321   : > { %1160 = vmatmul.mubr.msk.bf16.vlgmr.msra.gmra.mrb[0].mxu1 %vm579_vm4, %v574_v29  ;;  %v1124_v29 = vld [vmem:[%s2209_s30] ss:$0 sm:$0xff] (!%p1109_p5) }
 0x322   : > { %1170 = vmatpush3.bf16.xpose.msra.mxu1 %v704_v33  ;;  %1171 = vmatprep.mubr.msk.bf16.mxu1 %vm1596_vm2, %v1595_v18  ;;  %v877_v30 = vadd.f32 (!%p1109_p5), %v1124_v29, %v1928_v0 }
 0x323   : > { %1181 = vmatprep.subr.bf16.mxu1 %v1595_v18 }
 0x329   : > { %1172 = vmatmul.mubr.msk.bf16.vlgmr.msra.gmra.mrb[4].mxu1 %vm579_vm4, %v697_v34 }
 0x32a   : > { %1183 = vmatprep.mubr.msk.bf16.mxu1 %vm1596_vm2, %v1595_v18  ;;  %1182 = vmatpush3.bf16.msra.mxu1 %v1338_v13 }
 0x3f4   : > { %v620_v42 = vpop.f32.mrb[0].mxu1 }
 0x3f5   : > { %v632_v43 = vsub.f32 %v620_v42, %v630_v41  ;;  %v1161_v44 = vpop.f32.mrb[1].mxu1 }
 0x3f6   : > { %v623_v45 = vpop.f32.mrb[2].mxu1 }
 0x3f7   : > { %v1162_v46 = vpop.f32.mrb[3].mxu1  ;;  %v633_v47 = vsel %vm579_vm4, %v632_v43, -inf }
 0x3f8   : > { %634 = vmax.xlane.f32.xlu1 %v633_v47 }
 0x3fc   : > { %v740_v48 = vpop.f32.mrb[4].mxu1 }
 0x3fd   : > { %v746_v49 = vsub.f32 %v740_v48, %v630_v41  ;;  %v1173_v50 = vpop.f32.mrb[5].mxu1 }
 0x3fe   : > { %v743_v51 = vpop.f32.mrb[6].mxu1 }
 0x3ff   : > { %v1174_v52 = vpop.f32.mrb[7].mxu1  ;;  %v747_v53 = vsel %vm579_vm4, %v746_v49, -inf }
 0x400   : > { %748 = vmax.xlane.f32.xlu0 %v747_v53 }
 0x485   : > { %v635_v54 = vpop.xlane.xlu1 %634 }
 0x486   : > { %v636_v55 = vsub.f32 %v632_v43, %v635_v54 }
 0x488   : > { %v637_v56 = vmul.f32 1.442695, %v636_v55 }
 0x48a   : > { %1339 = vpow2.f32 %v637_v56 }
 0x48d   : > { %v749_v57 = vpop.xlane.xlu0 %748 }
 0x48e   : > { %v750_v58 = vsub.f32 %v746_v49, %v749_v57 }
 0x490   : > { %v751_v59 = vmul.f32 1.442695, %v750_v58 }
 0x492   : > { %1341 = vpow2.f32 %v751_v59 }
 0x494   : > { %v1340_v60 = vpop.eup %1339 }
 0x495   : > { %v639_v61 = vsel %vm579_vm4, %v1340_v60, 0.0 }
 0x496   : > { %640 = vadd.xlane.f32.xlu0 %v639_v61 }
 0x49c   : > { %v1342_v62 = vpop.eup %1341 }
 0x49d   : > { %v753_v63 = vsel %vm579_vm4, %v1342_v62, 0.0 }
 0x49e   : > { %754 = vadd.xlane.f32.xlu1 %v753_v63 }
 0x4ac   : > { %646 = vrot.lane.b32.xlu0 %v575_v26, %s1600_s29 }
 0x4af   : > { %761 = vrot.lane.b32.xlu1 %v575_v26, %s1601_s26 }
 0x523   : > { %v641_v1 = vpop.xlane.xlu0 %640 }
 0x524   : > { %1343 = vrcp.f32 %v641_v1 }
 0x527   : > { %v647_v2 = vpop.permute.xlu0 %646 }
 0x528   : > { %v653_v3 = vsel %vm651_vm5, %v647_v2, 0 }
 0x529   : > { %1164 = vmatpush3.bf16.msra.mxu0 %v653_v3 }
 0x52a   : > { %1175 = vmatprep.subr.bf16.mxu0 %v1595_v18 }
 0x52b   : > { %v755_v4 = vpop.xlane.xlu1 %754 }
 0x52c   : > { %1345 = vrcp.f32 %v755_v4 }
 0x52e   : > { %v1344_v5 = vpop.eup %1343 }
 0x52f   : > { %v643_v6 = vmul.f32 %v1344_v5, %v1340_v60  ;;  %v762_v7 = vpop.permute.xlu1 %761 }
 0x530   : > { %v767_v9 = vsel %vm651_vm5, %v762_v7, 0 }
 0x531   : > { %644 = vst.msk [vmem:[%s1937_s17] sm:$0xff] %vm579_vm4, %v643_v6  ;;  %v645_v8 = vpack.c.bf16 %v643_v6, %v643_v6 }
 0x533   : > { %1166 = vmatmul.mubr.msk.bf16.vlgmr.msra.gmra.mrb[4].mxu0 %vm579_vm4, %v645_v8 }
 0x534   : > { %1176 = vmatpush3.bf16.msra.mxu0 %v767_v9  ;;  %1177 = vmatprep.mubr.msk.bf16.mxu0 %vm1596_vm2, %v1595_v18 }
 0x536   : > { %v1346_v10 = vpop.eup %1345 }
 0x537   : > { %v757_v11 = vmul.f32 %v1346_v10, %v1342_v62 }
 0x539   : > { %1119 = vst.msk [vmem:[%s1937_s17 + $0x8] sm:$0xff] %vm579_vm4, %v757_v11  ;;  %v760_v12 = vpack.c.bf16 %v757_v11, %v757_v11 }
 0x53b   : > { %1178 = vmatmul.mubr.msk.bf16.vlgmr.msra.gmra.mrb[8].mxu0 %vm579_vm4, %v760_v12 }
 0x606   : > { %v689_v14 = vpop.f32.mrb[4].mxu0 }
 0x607   : > { %v1167_v15 = vpop.f32.mrb[5].mxu0 }
 0x608   : > { %v692_v16 = vpop.f32.mrb[6].mxu0 }
 0x609   : > { %v1168_v17 = vpop.f32.mrb[7].mxu0 }
 0x60e   : > { %v803_v19 = vpop.f32.mrb[8].mxu0 }
 0x60f   : > { %810 = vrot.lane.b32.xlu1 %v803_v19, %s1602_s22  ;;  %v1179_v20 = vpop.f32.mrb[9].mxu0 }
 0x610   : > { %v806_v21 = vpop.f32.mrb[10].mxu0 }
 0x611   : > { %v1180_v18 = vpop.f32.mrb[11].mxu0 }
 0x681   : > { %v811_v22 = vpop.permute.xlu1 %810 }
 0x682   : > { %v813_v23 = vsel %vm579_vm4, %v689_v14, %v811_v22 }
 0x683   : > { %v814_v24 = vpack.c.bf16 %v813_v23, %v813_v23 }
 0x685   : > { %1184 = vmatmul.mubr.msk.bf16.vlgmr.msra.gmra.mrb[8].mxu1 %vm823_vm6, %v814_v24 }
 0x755   : > { %869 = sbr.rel (%p1109_p5) target bundleno = 1884 (0x75c), region = 68 }
 0x758   : > { %v861_v25 = vpop.f32.mrb[8].mxu1 }
 0x759   : > { %v1185_v26 = vpop.f32.mrb[9].mxu1  ;;  %v878_v31 = vadd.f32 (!%p1109_p5), %v877_v30, %v861_v25 }
 0x75a   : > { %v864_v27 = vpop.f32.mrb[10].mxu1 }
 0x75b   : > { %v1186_v28 = vpop.f32.mrb[11].mxu1  ;;  %879 = vst.msk [vmem:[%s1935_s9] sm:$0xff] (!%p1109_p5), %vm526_vm3, %v878_v31 }
 0x75c PF: > { %p1125_p0 = scmp.le.s32.totalorder %s1573_s18, 0 }
 0x75e   : > { %883 = sbr.rel (%p1125_p0) target bundleno = 1894 (0x766), region = 72 }
 0x762   : > { %v884_v32 = vld [vmem:[%s1935_s9] sm:$0xff] (!%p1125_p0) }
 0x763   : > { %v885_v33 = vadd.f32 (!%p1125_p0), %v884_v32, %v861_v25 }
 0x765   : > { %886 = vst.msk [vmem:[%s1935_s9] sm:$0xff] %vm526_vm3, %v885_v33 }
 0x766 PF: > { %s2210_s28 = sld [smem:[#allocation21_spill]]  ;;  %s1128_s15 = sshll.u32 %s1577_s19, 7 }
 0x767   : > { %s2211_s7 = sld [smem:[#allocation35_spill]]  ;;  %s906_s2 = sshll.u32 %s1935_s9, 4  ;;  %s907_s2 = int_to_ptr.vmem [resolvable:$true] %s906_s2 }
 0x768   : > { %s888_s23 = scalar_lea.sflag [#allocation5], %s1892_s6  ;;  %s1407_s27 = scalar_lea.vmem %s907_s2, 128 }
 0x769   : > { %p1408_p9 = scmp.ne.s32.totalorder %s907_s2, %s1407_s27  ;;  %s1603_s4 = smov [#allocation8]  }
 0x76a   : > { %s1411_s24 = sshll.u32 %s1603_s4, 4  ;;  %s1412_s24 = int_to_ptr.vmem [resolvable:$false] %s1411_s24 }
 0x76b   : > { %s1413_s5 = scalar_lea.vmem %s1412_s24, 256  ;;  %p1414_p8 = scmp.lt.s32.totalorder %s907_s2, %s1412_s24 }
 0x76c   : > { %p2212_p13 = scmp.ne.s32.totalorder %s2210_s28, 0  ;;  %p1415_p3 = scmp.lt.s32.totalorder %s1413_s5, %s1407_s27 }
 0x76d   : > { %s2017_s21 = scalar_lea.hbm %s2211_s7, %s1128_s15 }
 0x76e   : > { %p1409_p1 = pnand %p1408_p9, %p2212_p13  ;;  %p1416_p6 = por %p1415_p3, %p1414_p8 }
 0x770   : > { %p1410_p11 = pneg %p1409_p1 }
 0x772   : > { %p1417_p10 = pnand %p1416_p6, %p1410_p11 }
 0x774   : > { %1420 = shalt.err (!%p1417_p10)
}
 0x775   : > { %s1421_s9 = scalar_lea.hbm %s2017_s21, 128  ;;  %s1425_s26 = scalar_lea.hbm %s2211_s7, 256 }
 0x776   : > { %p1422_p4 = scmp.ne.s32.totalorder %s2017_s21, %s1421_s9  ;;  %p1426_p7 = scmp.lt.u32.totalorder %s2017_s21, %s2211_s7 }
 0x777   : > { %p1427_p5 = scmp.lt.u32.totalorder %s1425_s26, %s1421_s9  ;;  %p1429_p9 = scmp.lt.u32.totalorder %s1421_s9, %s2017_s21 }
 0x778   : > { %p1423_p2 = pnand %p1422_p4, %p2212_p13 }
 0x779   : > { %p1428_p0 = por %p1427_p5, %p1426_p7 }
 0x77a   : > { %p1424_p12 = pneg %p1423_p2 }
 0x77b   : > { %p1430_p1 = por %p1429_p9, %p1428_p0 }
 0x77d   : > { %p1431_p11 = pnand %p1430_p1, %p1424_p12 }
 0x77f   : > { %1434 = shalt.err (!%p1431_p11)
}
 0x780   : > { %s2213_s30 = sld [smem:[#allocation23_spill]]  ;;  %s1129_s15 = sshll.u32 %s1573_s18, 1 }
 0x781   : > { %1191 = dma.vmem_to_hbm [thread:$0]  (%p2212_p13), %s907_s2, 128, %s2017_s21, %s888_s23  }
 0x782   : > { %s1130_s12 = sshll.u32 %s1577_s19, 2  ;;  %s921_s27 = sshll.u32 %s1937_s17, 4  ;;  %s2041_s27 = int_to_ptr.vmem [resolvable:$true] %s921_s27 }
 0x783   : > { %s918_s8 = sadd.s32 %s1130_s12, %s1129_s15  ;;  %s2214_s9 = sld [smem:[#allocation36_spill]] }
 0x784   : > { %s1131_s4 = sshll.u32 %s918_s8, 7  ;;  %s2215_s6 = sand.u32 1, %s1541_s10  }
 0x785   : > { %s2050_s29 = scalar_lea.sflag [#allocation10], %s2215_s6  ;;  %s1435_s26 = scalar_lea.vmem %s2041_s27, 256 }
 0x786   : > { %p1436_p13 = scmp.ne.s32.totalorder %s2041_s27, %s1435_s26  ;;  %p2216_p8 = scmp.ne.s32.totalorder %s2213_s30, 0 }
 0x787   : > { %s1604_s17 = smov [#allocation9]  }
 0x788   : > { %p1437_p3 = pnand %p1436_p13, %p2216_p8  ;;  %s1439_s18 = sshll.u32 %s1604_s17, 4  ;;  %s1440_s18 = int_to_ptr.vmem [resolvable:$false] %s1439_s18 }
 0x789   : > { %s2046_s28 = scalar_lea.hbm %s2214_s9, %s1131_s4  ;;  %s1441_s19 = scalar_lea.vmem %s1440_s18, 512 }
 0x78a   : > { %p1438_p6 = pneg %p1437_p3  ;;  %p1442_p10 = scmp.lt.s32.totalorder %s2041_s27, %s1440_s18 }
 0x78b   : > { %p1443_p4 = scmp.lt.s32.totalorder %s1441_s19, %s1435_s26 }
 0x78d   : > { %p1444_p2 = por %p1443_p4, %p1442_p10 }
 0x78f   : > { %p1445_p12 = pnand %p1444_p2, %p1438_p6 }
 0x791   : > { %1448 = shalt.err (!%p1445_p12)
}
 0x792   : > { %s1449_s21 = scalar_lea.hbm %s2046_s28, 256  ;;  %s1453_s20 = scalar_lea.hbm %s2214_s9, 1024 }
 0x793   : > { %p1450_p7 = scmp.ne.s32.totalorder %s2046_s28, %s1449_s21  ;;  %p1454_p9 = scmp.lt.u32.totalorder %s2046_s28, %s2214_s9 }
 0x794   : > { %p1455_p1 = scmp.lt.u32.totalorder %s1453_s20, %s1449_s21  ;;  %p1457_p13 = scmp.lt.u32.totalorder %s1449_s21, %s2046_s28 }
 0x795   : > { %p1451_p5 = pnand %p1450_p7, %p2216_p8 }
 0x796   : > { %p1456_p11 = por %p1455_p1, %p1454_p9 }
 0x797   : > { %p1452_p0 = pneg %p1451_p5 }
 0x798   : > { %p1458_p3 = por %p1457_p13, %p1456_p11 }
 0x79a   : > { %p1459_p6 = pnand %p1458_p3, %p1452_p0 }
 0x79c   : > { %1462 = shalt.err (!%p1459_p6)
}
 0x79d   : > { %s1605_s12 = smov 128  }
 0x79e   : > { %1192 = dma.vmem_to_hbm [thread:$0]  (%p2216_p8), %s2041_s27, 256, %s2046_s28, %s2050_s29, %s1605_s12, %s1605_s12, %s1602_s22  }
 0x79f PF: > { %s2217_s8 = sld [smem:[#allocation20_spill]]  ;;  %s2218_s4 = sld [smem:[#allocation16_spill]] }
 0x7a0   : > { %s2219_s24 = sld [smem:[#allocation22_spill]] }
 0x7a5   : > { %p1210_p10 = scmp.ge.s32.totalorder %s2217_s8, 2  ;;  %s936_s5 = sand.u32 1, %s2218_s4  }
 0x7a6   : > { %p2220_p4 = scmp.ne.s32.totalorder %s2219_s24, 0  ;;  %s937_s6 = scalar_lea.sflag [#allocation5], %s936_s5 }
 0x7a8   : > { %p1203_p2 = pnand %p1210_p10, %p2220_p4 }
 0x7aa   : > { %1528 = dma.done.wait (!%p1203_p2), %s937_s6, 128  }
 0x7ab   : > { %1530 = vsyncadd (!%p1203_p2), %s937_s6, 4294967168  ;;  %s2221_s26 = sld [smem:[#allocation15_spill]]  ;;  %s2222_s17 = sld [smem:[#allocation24_spill]] }
 0x7b1   : > { %s945_s18 = sand.u32 1, %s2221_s26   ;;  %p2223_p12 = scmp.ne.s32.totalorder %s2222_s17, 0 }
 0x7b2   : > { %s946_s30 = scalar_lea.sflag [#allocation10], %s945_s18 }
 0x7b3   : > { %p1206_p7 = pnand %p1210_p10, %p2223_p12 }
 0x7b5   : > { %1532 = dma.done.wait (!%p1206_p7), %s946_s30, 256  }
 0x7b6   : > { %1534 = vsyncadd (!%p1206_p7), %s946_s30, 4294967040  ;;  %s32_s22 = sadd.s32 1, %s2217_s8   ;;  %s2225_s28 = sld [smem:[#allocation17_spill]] }
 0x7b7   : > { %p2083_p8 = scmp.ge.s32.totalorder %s32_s22, 6   ;;  %s2226_s17 = sld [smem:[#allocation27_spill]] }
 0x7b8   : > { %s2227_s18 = sld [smem:[#allocation18_spill]]  ;;  %s2228_s19 = sld [smem:[#allocation19_spill]] }
 0x7b9   : > { %s2229_s20 = sld [smem:[#allocation25_spill]]  ;;  %s2230_s21 = sld [smem:[#allocation26_spill]] }
 0x7ba   : > { %s2231_s30 = smov %s1541_s10  ;;  %s2232_s10 = smov %s1545_s11 }
 0x7bb   : > { %s2233_s11 = smov %s1859_s25  ;;  %s2234_s12 = smov %s1553_s13 }
 0x7bc   : > { %s2235_s13 = smov %s1557_s14  ;;  %s2236_s14 = smov %s1842_s0 }
 0x7bd   : > { %s2237_s15 = smov %s1565_s16  ;;  %s2238_s16 = smov %s2225_s28 }
 0x7be   :  { %31 = sbr.rel (!%p2083_p8) target bundleno = 24 (0x18), region = 149 }
 0x7c5   :  { %951 = vsyncpa [#allocation4], 1 }
 0x7c6   :  { %953 = vsyncpa [#allocation4 + $0x1], 1 }
 0x7c7   :  { %954 = vsyncpa [#allocation7], 1 }
 0x7c8   :  { %956 = vsyncpa [#allocation7 + $0x1], 1 }
 0x7c9   :  { %957 = vsyncpa [#allocation5], 1 }
 0x7ca   :  { %959 = vsyncpa [#allocation5 + $0x1], 1 }
 0x7cb   :  { %960 = vsyncpa [#allocation10], 1 }
 0x7cc   :  { %962 = vsyncpa [#allocation10 + $0x1], 1 }

</bundles_post_ra>
